<compile_context>
chip_gen: v7x
topology: tpu7x:2x2x1
jax: 0.10.0
libtpu: 0.0.40
codegen_flags: <defaults>
</compile_context>

<pallas_src>
import jax
import jax.numpy as jnp
from jax.experimental import pallas as pl
from jax.experimental.pallas import tpu as pltpu


def _value_net_kernel(x_ref, w1_ref, b1_ref, w2_ref, b2_ref, w3_ref, b3_ref,
                      o_ref):
    # x_ref : (num_inputs, tb)  VMEM (pipelined over the batch grid)
    # w1_ref: (H, num_inputs)   VMEM resident (PyTorch layout)
    # b1_ref: (H, 1)            VMEM resident (column; lane-broadcast add)
    # w2_ref: (H, H)            VMEM resident (PyTorch layout)
    # b2_ref: (H, 1)            VMEM resident
    # w3_ref: (H, 1)            VMEM resident (column of layer-3 weights)
    # b3_ref: (1, 1)            SMEM scalar
    # o_ref : (1, tb)           lane-dense output row
    x = x_ref[...]                                                   # (ni, tb)
    h1 = jnp.dot(w1_ref[...], x,
                 preferred_element_type=jnp.float32) + b1_ref[...]   # (H, tb)
    h1 = jnp.maximum(h1, 0.0)
    h2 = jnp.dot(w2_ref[...], h1,
                 preferred_element_type=jnp.float32) + b2_ref[...]   # (H, tb)
    h2 = jnp.maximum(h2, 0.0)
    # [1, H] @ [H, tb] replaced by lane-broadcast multiply + sublane reduce
    # (VPU + XLU slots; result is already the lane-dense output row).
    v = jnp.sum(h2 * w3_ref[...], axis=0, keepdims=True) + b3_ref[0, 0]
    o_ref[...] = v.astype(o_ref.dtype)


def value_network_forward(state, params, *, batch_tile=2048):
    """state: [B, num_inputs] f32 -> [B, 1] f32 (== PyTorch ValueNetwork.forward)."""
    w1, b1, w2, b2, w3, b3 = params
    B, num_inputs = state.shape
    H = w1.shape[0]

    # Clamp the batch tile to the (128-rounded-up) batch and keep it a
    # multiple of 128.  batch_tile is the main throughput knob for large B;
    # with the default 2048 a large batch yields >=2 grid steps so both v7x
    # TensorCores get work.  VMEM footprint per step is only a few hundred KB
    # (input 2x(8,tb)x4B double-buffered + (32,tb) intermediates), far below
    # the scoped default on v5e/v6e/v7x, so no vmem_limit_bytes override needed.
    b_up = ((B + 127) // 128) * 128
    tb = max(128, (min(batch_tile, b_up) // 128) * 128)
    grid = (pl.cdiv(B, tb),)

    # Feature-major HBM layout for the dominant DMA stream: (num_inputs, B)
    # makes each streamed block (num_inputs, tb) lane-dense instead of tb
    # 16-byte rows each lane-padded to 512 B in VMEM.
    # (If the producer can emit [num_inputs, B] directly, drop this transpose.)
    state_t = state.T

    out_row = pl.pallas_call(
        _value_net_kernel,
        out_shape=jax.ShapeDtypeStruct((1, B), jnp.float32),
        grid=grid,
        in_specs=[
            # state^T: pipelined batch tiles (ragged last block handled by Pallas)
            pl.BlockSpec((num_inputs, tb), lambda i: (0, i)),
            # weights / biases: constant index_map -> fetched once, VMEM resident
            pl.BlockSpec((H, num_inputs), lambda i: (0, 0)),    # w1
            pl.BlockSpec((H, 1), lambda i: (0, 0)),             # b1
            pl.BlockSpec((H, H), lambda i: (0, 0)),             # w2
            pl.BlockSpec((H, 1), lambda i: (0, 0)),             # b2
            pl.BlockSpec((H, 1), lambda i: (0, 0)),             # w3 (column)
            # b3 scalar -> SMEM, no padded VMEM tile / vector load
            pl.BlockSpec(memory_space=pltpu.MemorySpace.SMEM),
        ],
        # lane-dense output: batch in the lane axis, tb a multiple of 128
        out_specs=pl.BlockSpec((1, tb), lambda i: (0, i)),
        compiler_params=pltpu.CompilerParams(
            dimension_semantics=("parallel",)),
    )(state_t, w1, b1, w2, b2, w3, b3)

    return out_row[0, :].reshape(B, 1)


def xavier_uniform(key, fan_in, fan_out, shape, gain=1.0):
    # torch.nn.init.xavier_uniform_ with gain=1 (limit depends on fan_in/out,
    # not on the storage layout).
    limit = gain * (6.0 / (fan_in + fan_out)) ** 0.5
    return jax.random.uniform(key, shape, jnp.float32, -limit, limit)


def init_value_network(key, num_inputs, hidden_dim):
    k1, k2, k3 = jax.random.split(key, 3)
    w1 = xavier_uniform(k1, num_inputs, hidden_dim, (hidden_dim, num_inputs))
    b1 = jnp.zeros((hidden_dim, 1), jnp.float32)
    w2 = xavier_uniform(k2, hidden_dim, hidden_dim, (hidden_dim, hidden_dim))
    b2 = jnp.zeros((hidden_dim, 1), jnp.float32)
    w3 = xavier_uniform(k3, hidden_dim, 1, (hidden_dim, 1))   # linear3.weight^T
    b3 = jnp.zeros((1, 1), jnp.float32)
    return (w1, b1, w2, b2, w3, b3)


def _reference(state, params):
    w1, b1, w2, b2, w3, b3 = params
    h = jnp.maximum(state @ w1.T + b1.T, 0.0)
    h = jnp.maximum(h @ w2.T + b2.T, 0.0)
    return h @ w3 + b3


if __name__ == "__main__":
    key = jax.random.PRNGKey(0)
    k_param, k_s1, k_s2, k_s3 = jax.random.split(key, 4)

    num_inputs = 4    # state dim
    hidden_dim = 32
    params = init_value_network(k_param, num_inputs, hidden_dim)

    # Tiny batch (matches the RL use case; exercises tile clamping + ragged tail).
    state_small = jax.random.normal(k_s1, (2, num_inputs), jnp.float32)
    out_small = jax.block_until_ready(value_network_forward(state_small, params))
    assert out_small.shape == (2, 1)
    assert jnp.allclose(out_small, _reference(state_small, params),
                        atol=1e-5, rtol=1e-5)

    # Non-128-aligned batch, single clamped tile (ragged last block).
    state_mid = jax.random.normal(k_s2, (300, num_inputs), jnp.float32)
    out_mid = jax.block_until_ready(value_network_forward(state_mid, params))
    assert out_mid.shape == (300, 1)
    assert jnp.allclose(out_mid, _reference(state_mid, params),
                        atol=1e-5, rtol=1e-5)

    # Multi-step grid with a ragged last block (exercises the pipelined path).
    state_big = jax.random.normal(k_s3, (2600, num_inputs), jnp.float32)
    out_big = jax.block_until_ready(
        value_network_forward(state_big, params, batch_tile=1024))
    assert out_big.shape == (2600, 1)
    assert jnp.allclose(out_big, _reference(state_big, params),
                        atol=1e-5, rtol=1e-5)

    print("KERNEL_OK")
</pallas_src>

<mosaic_0001>
module attributes {stable_mosaic.version = 11 : i64} {
  func.func @_value_net_kernel(%arg0: i32, %arg1: memref<4x128xf32, #tpu.memory_space<vmem>>, %arg2: memref<32x4xf32, #tpu.memory_space<vmem>>, %arg3: memref<32x1xf32, #tpu.memory_space<vmem>>, %arg4: memref<32x32xf32, #tpu.memory_space<vmem>>, %arg5: memref<32x1xf32, #tpu.memory_space<vmem>>, %arg6: memref<32x1xf32, #tpu.memory_space<vmem>>, %arg7: memref<1x1xf32, #tpu.memory_space<smem>>, %arg8: memref<1x128xf32, #tpu.memory_space<vmem>>) attributes {dimension_semantics = [#tpu.dimension_semantics<parallel>], iteration_bounds = array<i64: 1>, scalar_prefetch = 0 : i64, scratch_operands = 0 : i64, tpu.core_type = #tpu.core_type<tc>, window_params = [{transform_indices = @transform_0, window_bounds = array<i64: 4, 128>}, {pipeline_mode = #tpu.pipeline_mode<synchronous>, transform_indices = @transform_1, window_bounds = array<i64: 32, 4>}, {pipeline_mode = #tpu.pipeline_mode<synchronous>, transform_indices = @transform_2, window_bounds = array<i64: 32, 1>}, {pipeline_mode = #tpu.pipeline_mode<synchronous>, transform_indices = @transform_3, window_bounds = array<i64: 32, 32>}, {pipeline_mode = #tpu.pipeline_mode<synchronous>, transform_indices = @transform_4, window_bounds = array<i64: 32, 1>}, {pipeline_mode = #tpu.pipeline_mode<synchronous>, transform_indices = @transform_5, window_bounds = array<i64: 32, 1>}, {transform_indices = @transform_6, window_bounds = array<i64: 1, 1>}, {transform_indices = @transform_7, window_bounds = array<i64: 1, 128>}]} {
    %c0 = arith.constant 0 : index
    %c0_0 = arith.constant 0 : index
    %0 = vector.load %arg1[%c0, %c0_0] : memref<4x128xf32, #tpu.memory_space<vmem>>, vector<4x128xf32>
    %c0_1 = arith.constant 0 : index
    %c0_2 = arith.constant 0 : index
    %1 = vector.load %arg2[%c0_1, %c0_2] : memref<32x4xf32, #tpu.memory_space<vmem>>, vector<32x4xf32>
    %cst = arith.constant dense<0.000000e+00> : vector<32x128xf32>
    %2 = tpu.matmul %1, %0, %cst {dimension_numbers = #tpu.dot_dimension_numbers<[1], [0], [0], [1], [0, 0, 1, 1], [], []>} : vector<32x4xf32>, vector<4x128xf32>, vector<32x128xf32> -> vector<32x128xf32>
    %c0_3 = arith.constant 0 : index
    %c0_4 = arith.constant 0 : index
    %3 = vector.load %arg3[%c0_3, %c0_4] : memref<32x1xf32, #tpu.memory_space<vmem>>, vector<32x1xf32>
    %4 = vector.broadcast %3 : vector<32x1xf32> to vector<32x128xf32>
    %5 = arith.addf %2, %4 : vector<32x128xf32>
    %cst_5 = arith.constant 0.000000e+00 : f32
    %6 = vector.broadcast %cst_5 : f32 to vector<32x128xf32>
    %7 = arith.maximumf %5, %6 : vector<32x128xf32>
    %c0_6 = arith.constant 0 : index
    %c0_7 = arith.constant 0 : index
    %8 = vector.load %arg4[%c0_6, %c0_7] : memref<32x32xf32, #tpu.memory_space<vmem>>, vector<32x32xf32>
    %cst_8 = arith.constant dense<0.000000e+00> : vector<32x128xf32>
    %9 = tpu.matmul %8, %7, %cst_8 {dimension_numbers = #tpu.dot_dimension_numbers<[1], [0], [0], [1], [0, 0, 1, 1], [], []>} : vector<32x32xf32>, vector<32x128xf32>, vector<32x128xf32> -> vector<32x128xf32>
    %c0_9 = arith.constant 0 : index
    %c0_10 = arith.constant 0 : index
    %10 = vector.load %arg5[%c0_9, %c0_10] : memref<32x1xf32, #tpu.memory_space<vmem>>, vector<32x1xf32>
    %11 = vector.broadcast %10 : vector<32x1xf32> to vector<32x128xf32>
    %12 = arith.addf %9, %11 : vector<32x128xf32>
    %cst_11 = arith.constant 0.000000e+00 : f32
    %13 = vector.broadcast %cst_11 : f32 to vector<32x128xf32>
    %14 = arith.maximumf %12, %13 : vector<32x128xf32>
    %c0_12 = arith.constant 0 : index
    %c0_13 = arith.constant 0 : index
    %15 = vector.load %arg6[%c0_12, %c0_13] : memref<32x1xf32, #tpu.memory_space<vmem>>, vector<32x1xf32>
    %16 = vector.broadcast %15 : vector<32x1xf32> to vector<32x128xf32>
    %17 = arith.mulf %14, %16 : vector<32x128xf32>
    %cst_14 = arith.constant dense<0.000000e+00> : vector<128xf32>
    %18 = vector.multi_reduction <add>, %17, %cst_14 [0] : vector<32x128xf32> to vector<128xf32>
    %19 = vector.shape_cast %18 : vector<128xf32> to vector<1x128xf32>
    %c0_15 = arith.constant 0 : index
    %c0_16 = arith.constant 0 : index
    %20 = memref.load %arg7[%c0_15, %c0_16] : memref<1x1xf32, #tpu.memory_space<smem>>
    %21 = vector.broadcast %20 : f32 to vector<1x128xf32>
    %22 = arith.addf %19, %21 : vector<1x128xf32>
    %c0_17 = arith.constant 0 : index
    %c0_18 = arith.constant 0 : index
    %23 = vector.load %arg8[%c0_17, %c0_18] : memref<1x128xf32, #tpu.memory_space<vmem>>, vector<1x128xf32>
    tpu.vector_store %arg8[%c0_17, %c0_18], %22 {strides = array<i32>} : memref<1x128xf32, #tpu.memory_space<vmem>>, vector<1x128xf32>,
    return
  }
  func.func @transform_0(%arg0: i32) -> (i32, i32) {
    %c0_i32 = arith.constant 0 : i32
    %c0_i32_0 = arith.constant 0 : i32
    return %c0_i32, %arg0 : i32, i32
  }
  func.func @transform_1(%arg0: i32) -> (i32, i32) {
    %c0_i32 = arith.constant 0 : i32
    %c0_i32_0 = arith.constant 0 : i32
    %c0_i32_1 = arith.constant 0 : i32
    return %c0_i32, %c0_i32_0 : i32, i32
  }
  func.func @transform_2(%arg0: i32) -> (i32, i32) {
    %c0_i32 = arith.constant 0 : i32
    %c0_i32_0 = arith.constant 0 : i32
    %c0_i32_1 = arith.constant 0 : i32
    return %c0_i32, %c0_i32_0 : i32, i32
  }
  func.func @transform_3(%arg0: i32) -> (i32, i32) {
    %c0_i32 = arith.constant 0 : i32
    %c0_i32_0 = arith.constant 0 : i32
    %c0_i32_1 = arith.constant 0 : i32
    return %c0_i32, %c0_i32_0 : i32, i32
  }
  func.func @transform_4(%arg0: i32) -> (i32, i32) {
    %c0_i32 = arith.constant 0 : i32
    %c0_i32_0 = arith.constant 0 : i32
    %c0_i32_1 = arith.constant 0 : i32
    return %c0_i32, %c0_i32_0 : i32, i32
  }
  func.func @transform_5(%arg0: i32) -> (i32, i32) {
    %c0_i32 = arith.constant 0 : i32
    %c0_i32_0 = arith.constant 0 : i32
    %c0_i32_1 = arith.constant 0 : i32
    return %c0_i32, %c0_i32_0 : i32, i32
  }
  func.func @transform_6(%arg0: i32) -> (i32, i32) {
    %c0_i32 = arith.constant 0 : i32
    %c0_i32_0 = arith.constant 0 : i32
    %c0_i32_1 = arith.constant 0 : i32
    return %c0_i32, %c0_i32_0 : i32, i32
  }
  func.func @transform_7(%arg0: i32) -> (i32, i32) {
    %c0_i32 = arith.constant 0 : i32
    %c0_i32_0 = arith.constant 0 : i32
    return %c0_i32, %arg0 : i32, i32
  }
}

</mosaic_0001>

<bundles_post_ra>
// kernel: tpu_custom_call.1
= control target key start
LH: loop header
LB: loop body
LE: loop exit
PB: predicated region body
PF: predicated region fallthrough
CT: control target
= control target key end

     0   :  { %vm70_vm0 = vcmask 1043456   ;;  %vm57_vm1 = vcmask 31744   ;;  %v432_v5 = vmov 0   ;;  %s560_s0 = inlined_call_operand.vmem [shape: f32[4,2], index: 0, kind: input, shape index: {}]   ;;  %s561_s1 = inlined_call_operand.vmem [shape: f32[32,4], index: 1, kind: input, shape index: {}]   ;;  %s562_s2 = inlined_call_operand.vmem [shape: f32[32,1], index: 2, kind: input, shape index: {}]   ;;  %s563_s3 = inlined_call_operand.vmem [shape: f32[32,32], index: 3, kind: input, shape index: {}]   ;;  %s564_s4 = inlined_call_operand.vmem [shape: f32[32,1], index: 4, kind: input, shape index: {}]   ;;  %s565_s5 = inlined_call_operand.vmem [shape: f32[32,1], index: 5, kind: input, shape index: {}]   ;;  %s566_s6 = inlined_call_operand.<no memory space> [shape: f32[1,1], index: 6, kind: input, shape index: {}]   ;;  %s567_s7 = inlined_call_operand.hbm [shape: f32[1,2], index: 7, kind: output, shape index: {}]  }
   0x1   :  { %v28_v0 = vld [vmem:[%s560_s0] sm:$0xf]  ;;  %v30_v2 = vld [vmem:[%s561_s1 + $0x8] sm:$0xff]  ;;  %v31_v3 = vld [vmem:[%s561_s1 + $0x10] sm:$0xff]  ;;  %406 = vset.pattern.permute.xlu0 %v432_v5  ;;  %407 = vset.pattern.permute.xlu1 %v432_v5 }
   0x2   :  { %v29_v1 = vld [vmem:[%s561_s1] sm:$0xff]  ;;  %370 = vmatprep.subr.msk.mxu0 %vm70_vm0, %v28_v0  ;;  %v35_v6 = vld [vmem:[%s562_s2 + $0x10] sm:$0xff]  ;;  %v32_v7 = vld [vmem:[%s561_s1 + $0x18] sm:$0xff] }
   0x3   :  { %372 = vmatprep.mubr.msk.f32.mxu0 %vm57_vm1, %v29_v1  ;;  %v33_v4 = vld [vmem:[%s562_s2] sm:$0xff]  ;;  %371 = vmatpush3.msk.msra.mxu0 %vm70_vm0, %v28_v0  ;;  %v34_v8 = vld [vmem:[%s562_s2 + $0x8] sm:$0xff] }
   0x4   :  { %373 = vmatmul.mubr.msk.f32.vlgmr.msra.gmra.mrb[0].mxu0 %vm57_vm1, %v30_v2  ;;  %39 = vperm.xlu0 %406, %v33_v4  }
   0x5   :  { %375 = vmatprep.mubr.msk.f32.mxu0 %vm57_vm1, %v31_v3  ;;  %49 = vperm.xlu1 %407, %v35_v6  }
   0x6   :  { %13 = vsyncpa [#allocation4], 0  ;;  %v36_v9 = vld [vmem:[%s562_s2 + $0x18] sm:$0xff]  ;;  %v167_v10 = vld [vmem:[%s564_s4] sm:$0xff]  ;;  %vm191_vm2 = vcmask 261120   ;;  %s433_s15 = smov [#allocation3]  }
   0x7   :  { %v168_v11 = vld [vmem:[%s564_s4 + $0x8] sm:$0xff]  ;;  %v169_v12 = vld [vmem:[%s564_s4 + $0x10] sm:$0xff]  ;;  %v170_v13 = vld [vmem:[%s564_s4 + $0x18] sm:$0xff]  ;;  %s340_s16 = sshll.u32 %s433_s15, 4  ;;  %s341_s16 = int_to_ptr.vmem [resolvable:$true] %s340_s16 }
   0x8   :  { %376 = vmatmul.mubr.msk.f32.gmra.mrb[2].mxu0 %vm57_vm1, %v32_v7  ;;  %44 = vperm.xlu0 %406, %v34_v8   ;;  %v293_v14 = vld [vmem:[%s565_s5] sm:$0xff]  ;;  %v294_v15 = vld [vmem:[%s565_s5 + $0x8] sm:$0xff]  ;;  %v295_v16 = vld [vmem:[%s565_s5 + $0x10] sm:$0xff]  ;;  %v331_v8 = vstv %s566_s6  ;;  %s408_s17 = scalar_lea.vmem %s341_s16, 16  ;;  %s412_s18 = scalar_lea.vmem %s341_s16, 32 }
   0x9   :  { %54 = vperm.xlu1 %407, %v36_v9   ;;  %v296_v17 = vld [vmem:[%s565_s5 + $0x18] sm:$0xff]  ;;  %v163_v18 = vld [vmem:[%s563_s3] sm:$0xff]  ;;  %v165_v19 = vld [vmem:[%s563_s3 + $0x10] sm:$0xff]  ;;  %p409_p0 = scmp.ne.s32.totalorder %s341_s16, %s408_s17  ;;  %p413_p1 = scmp.lt.s32.totalorder %s341_s16, %s341_s16 }
   0xa   :  { %386 = vmatprep.mubr.msk.f32.mxu0 %vm191_vm2, %v163_v18  ;;  %389 = vmatprep.mubr.msk.f32.mxu1 %vm191_vm2, %v165_v19  ;;  %v164_v38 = vld [vmem:[%s563_s3 + $0x8] sm:$0xff]  ;;  %v166_v39 = vld [vmem:[%s563_s3 + $0x18] sm:$0xff]  ;;  %p414_p2 = scmp.lt.s32.totalorder %s412_s18, %s408_s17 }
   0xc   :  { %173 = vperm.xlu0 %406, %v167_v10   ;;  %p415_p3 = por %p414_p2, %p413_p1 }
   0xd   :  { %178 = vperm.xlu1 %407, %v168_v11  }
   0xe   :  { %p416_p4 = pnand %p415_p3, %p409_p0 }
  0x10   :  { %183 = vperm.xlu0 %406, %v169_v12  }
  0x11   :  { %188 = vperm.xlu1 %407, %v170_v13  }
  0x14   :  { %299 = vperm.xlu0 %406, %v293_v14  }
  0x15   :  { %304 = vperm.xlu1 %407, %v294_v15  }
  0x18   :  { %309 = vperm.xlu0 %406, %v295_v16  }
  0x19   :  { %314 = vperm.xlu1 %407, %v296_v17  }
  0x83   :  { %v40_v20 = vpop.permute.xlu0 %39 }
  0x84   :  { %v50_v21 = vpop.permute.xlu1 %49 }
  0x87   :  { %v45_v22 = vpop.permute.xlu0 %44 }
  0x88   :  { %v55_v28 = vpop.permute.xlu1 %54 }
  0x8b   :  { %v174_v40 = vpop.permute.xlu0 %173 }
  0x8c   :  { %v179_v41 = vpop.permute.xlu1 %178 }
  0x8f   :  { %v184_v42 = vpop.permute.xlu0 %183 }
  0x90   :  { %v189_v43 = vpop.permute.xlu1 %188 }
  0x93   :  { %v300_v44 = vpop.permute.xlu0 %299 }
  0x94   :  { %v305_v53 = vpop.permute.xlu1 %304 }
  0x97   :  { %v310_v60 = vpop.permute.xlu0 %309 }
  0x98   :  { %v315_v63 = vpop.permute.xlu1 %314 }
  0xd7   :  { %v374_v23 = vpop.f32.mrb[0].mxu0 }
  0xd8   :  { %v146_v24 = vadd.f32 %v374_v23, %v45_v22  ;;  %v140_v25 = vpop.f32.mrb[1].mxu0 }
  0xd9   :  { %v141_v26 = vadd.f32 %v140_v25, %v40_v20 }
  0xda   :  { %v160_v27 = vmax.f32 %v146_v24, 0.0 }
  0xdb   :  { %v159_v29 = vmax.f32 %v141_v26, 0.0  ;;  %v377_v30 = vpop.f32.mrb[2].mxu0 }
  0xdc   :  { %v156_v31 = vadd.f32 %v377_v30, %v55_v28  ;;  %v150_v32 = vpop.f32.mrb[3].mxu0 }
  0xdd   :  { %v392_v33 = vpack.c.bf16 %v160_v27, %v159_v29  ;;  %v151_v34 = vadd.f32 %v150_v32, %v50_v21 }
  0xde   :  { %v162_v35 = vmax.f32 %v156_v31, 0.0 }
  0xdf   :  { %v161_v36 = vmax.f32 %v151_v34, 0.0  ;;  %393 = vmatprep.subr.bf16.mxu0 %v392_v33  ;;  %400 = vmatprep.subr.bf16.mxu1 %v392_v33 }
  0xe0   :  { %395 = vmatpush3.bf16.msra.mxu0 %v392_v33  ;;  %402 = vmatpush3.bf16.msra.mxu1 %v392_v33 }
  0xe1   :  { %v396_v37 = vpack.c.bf16 %v162_v35, %v161_v36 }
  0xe3   :  { %397 = vmatprep.subr.bf16.mxu0 %v396_v37  ;;  %401 = vmatprep.subr.bf16.mxu1 %v396_v37 }
  0xe4   :  { %399 = vmatpush3.bf16.msra.mxu0 %v396_v37  ;;  %403 = vmatpush3.bf16.msra.mxu1 %v396_v37 }
  0xe7   :  { %387 = vmatmul.mubr.msk.f32.vlgmr.msra.gmra.mrb[4].mxu0 %vm191_vm2, %v164_v38  ;;  %390 = vmatmul.mubr.msk.f32.vlgmr.msra.gmra.mrb[0].mxu1 %vm191_vm2, %v166_v39 }
 0x1ba   :  { %v388_v45 = vpop.f32.mrb[4].mxu0  ;;  %v391_v46 = vpop.f32.mrb[0].mxu1 }
 0x1bb   :  { %v276_v47 = vadd.f32 %v388_v45, %v179_v41  ;;  %v270_v48 = vpop.f32.mrb[5].mxu0  ;;  %v280_v49 = vpop.f32.mrb[1].mxu1  ;;  %v286_v50 = vadd.f32 %v391_v46, %v189_v43 }
 0x1bc   :  { %v271_v51 = vadd.f32 %v270_v48, %v174_v40  ;;  %v281_v52 = vadd.f32 %v280_v49, %v184_v42 }
 0x1bd   :  { %v290_v54 = vmax.f32 %v276_v47, 0.0  ;;  %v292_v58 = vmax.f32 %v286_v50, 0.0 }
 0x1be   :  { %v289_v55 = vmax.f32 %v271_v51, 0.0  ;;  %v291_v56 = vmax.f32 %v281_v52, 0.0 }
 0x1bf   :  { %v318_v57 = vmul.f32 %v305_v53, %v290_v54  ;;  %v320_v0 = vmul.f32 %v315_v63, %v292_v58 }
 0x1c0   :  { %v317_v59 = vmul.f32 %v300_v44, %v289_v55  ;;  %v319_v62 = vmul.f32 %v310_v60, %v291_v56 }
 0x1c2   :  { %v321_v61 = vadd.f32 %v318_v57, %v317_v59 }
 0x1c4   :  { %v322_v1 = vadd.f32 %v321_v61, %v319_v62 }
 0x1c6   :  { %v323_v2 = vadd.f32 %v322_v1, %v320_v0 }
 0x1c8   :  { %v324_v3 = vrot.slane %v323_v2, 4 }
 0x1ca   :  { %v325_v4 = vadd.f32 %v324_v3, %v323_v2 }
 0x1cc   :  { %v326_v5 = vrot.slane %v325_v4, 2 }
 0x1ce   :  { %v327_v6 = vadd.f32 %v326_v5, %v325_v4 }
 0x1d0   :  { %v328_v7 = vrot.slane %v327_v6, 1 }
 0x1d2   :  { %v329_v9 = vadd.f32 %v328_v7, %v327_v6 }
 0x1d4   :  { %v332_v10 = vadd.f32 %v331_v8, %v329_v9 }
 0x1d6   :  { %333 = vst [vmem:[#allocation3] sm:$0x1] %v332_v10 }
 0x1d7   :  { %419 = shalt.err (!%p416_p4)
}
 0x1d8   :  { %s420_s20 = scalar_lea.hbm %s567_s7, 16 }
 0x1d9   :  { %p421_p5 = scmp.ne.s32.totalorder %s567_s7, %s420_s20  ;;  %p424_p6 = scmp.lt.u32.totalorder %s420_s20, %s567_s7 }
 0x1db   :  { %p426_p7 = pnand %p424_p6, %p421_p5 }
 0x1dd   :  { %429 = shalt.err (!%p426_p7)
}
 0x1de   :  { %343 = dma.vmem_to_hbm [thread:$0]  %s341_s16, 16, %s567_s7, [#allocation4]  }
 0x1df   :  { %430 = dma.done.wait [#allocation4], 16  }
 0x1e0   :  { %431 = vsyncadd [#allocation4], 4294967280 }
 0x1e1   :  { %347 = vsyncpa [#allocation4], 1 }

</bundles_post_ra>
